<compile_context>
chip_gen: v7x
topology: tpu7x:2x2x1
jax: 0.10.0
libtpu: 0.0.40
codegen_flags: <defaults>
</compile_context>

<pallas_src>
import functools

import jax
import jax.numpy as jnp
from jax.experimental import pallas as pl
from jax.experimental.pallas import tpu as pltpu


def _round_up(x, n):
    return (x + n - 1) // n * n


def _simconv_kernel(Lt_ref, x_ref, theta_ref, bias_ref, o_ref, s_ref, *,
                    K, C_in_pad, batch_block, matmul_dtype):
    """One grid step handles `batch_block` batch elements.

    Lt_ref:    (M, M)               matmul_dtype   (= L^T, transposed in wrapper)
    x_ref:     (bb*C_in_pad, M)     f32            rows ordered (b, i)
    theta_ref: (C_out, K*C_in_pad)  matmul_dtype   cols ordered (k, i)
    bias_ref:  (C_out, 1)           f32
    o_ref:     (bb, C_out, M)
    s_ref:     (bb*K*C_in_pad, M)   f32 VMEM scratch, rows ordered (b, k, i)
    """
    Lt = Lt_ref[...]                      # (M, M), already matmul_dtype
    M = Lt.shape[0]
    KC = K * C_in_pad

    def stage(t, k):
        # Write T_k into the staging scratch as it is produced.  All offsets
        # are static multiples of the f32 sublane size (C_in_pad % 8 == 0), so
        # these are aligned full-tile stores: no misaligned copies, no XLU
        # retiling (replaces the old per-batch jnp.concatenate).
        for b in range(batch_block):
            dst0 = b * KC + k * C_in_pad
            s_ref[dst0:dst0 + C_in_pad, :] = t[b * C_in_pad:(b + 1) * C_in_pad, :]

    # --- Chebyshev recurrence over ALL batch*channel rows at once ------------
    # One MXU matmul per Chebyshev order.  L^T keeps the contraction on
    # LHS-lanes x RHS-sublanes (plain matmul, no in-kernel transpose).
    # Recurrence state and accumulation stay f32; only MXU operands are cast.
    t_prev = x_ref[...]                   # (R, M) f32, R = bb*C_in_pad
    stage(t_prev, 0)
    if K > 1:
        t_curr = jnp.dot(t_prev.astype(matmul_dtype), Lt,
                         preferred_element_type=jnp.float32)
        stage(t_curr, 1)
        for k in range(2, K):
            lt = jnp.dot(t_curr.astype(matmul_dtype), Lt,
                         preferred_element_type=jnp.float32)
            t_next = 2.0 * lt - t_prev    # f32 elementwise (VPU)
            stage(t_next, k)
            t_prev, t_curr = t_curr, t_next

    # --- Fused theta contraction ---------------------------------------------
    theta = theta_ref[...]                # (C_out, K*C_in_pad), matmul_dtype
    C_out = theta.shape[0]
    # Hoist the bias broadcast out of the per-b loop (JAX does not CSE it).
    bias_bcast = jnp.broadcast_to(bias_ref[...], (C_out, M))   # f32

    for b in range(batch_block):
        s_b = s_ref[b * KC:(b + 1) * KC, :]     # aligned contiguous (KC, M) slice
        y_b = jnp.dot(theta, s_b.astype(matmul_dtype),
                      preferred_element_type=jnp.float32)      # (C_out, M)
        o_ref[b] = (y_b + bias_bcast).astype(o_ref.dtype)


def _choose_batch_block(B, C_in_pad, target_rows=256):
    """Fill the MXU (aim for batch_block*C_in_pad >= ~256 rows on v6e/v7x)
    while keeping >= 2 grid steps when B allows (v7x megacore sharding)."""
    divisors = [d for d in range(1, B + 1) if B % d == 0]
    good = [d for d in divisors if d * C_in_pad >= target_rows and B // d >= 2]
    if good:
        return min(good)          # most grid steps that still fill the MXU
    return B                      # otherwise maximize MXU rows (single group)


def simplicial_convolution(L, x, theta, bias, *, K, batch_block=None,
                           matmul_dtype=jnp.bfloat16):
    """L: (M, M), x: (B, C_in, M), theta: (C_out, C_in, K), bias: (1, C_out, 1).

    `matmul_dtype` only controls the MXU operand precision (L^T, theta and the
    per-dot casts of the f32 Chebyshev state).  Default bf16 runs the
    FLOP-dominant recurrence at the MXU's bf16 rate on v5e/v6e/v7x and halves
    L's DMA/VMEM footprint; pass jnp.float32 for tight parity with an f32
    reference.
    """
    B, C_in, M = x.shape
    C_out = theta.shape[0]
    assert L.shape == (M, M)
    assert theta.shape == (C_out, C_in, K)
    assert M % 128 == 0, "simplex dim M must be a multiple of 128 (TPU lanes)"

    # Pad C_in to the f32 sublane multiple: every per-(b,k) row block is
    # (8,128)-aligned in the kernel and any batch_block keeps the x BlockSpec
    # legal.  Padded channels are exact zeros and theta gets matching zero
    # columns, so they contribute nothing to the output.
    C_in_pad = _round_up(C_in, 8)

    if batch_block is None:
        batch_block = _choose_batch_block(B, C_in_pad)
    assert B % batch_block == 0
    num_groups = B // batch_block
    bb = batch_block

    f32 = jnp.float32
    # L^T so the in-kernel recurrence dot needs no Mosaic-inserted transpose.
    # Cast in the wrapper so DMA bytes / VMEM block are halved when bf16.
    Lt = jnp.transpose(L).astype(matmul_dtype)

    # x padded + flattened to rows ordered (b, i): contiguous, cheap.
    x_pad = jnp.pad(x.astype(f32), ((0, 0), (0, C_in_pad - C_in), (0, 0)))
    x_flat = jnp.reshape(x_pad, (B * C_in_pad, M))

    # theta_flat[o, k*C_in_pad + i] = theta[o, i, k]; zero for padded i.
    theta_t = jnp.transpose(theta, (0, 2, 1))                    # (C_out, K, C_in)
    theta_t = jnp.pad(theta_t, ((0, 0), (0, 0), (0, C_in_pad - C_in)))
    theta_flat = jnp.reshape(theta_t, (C_out, K * C_in_pad)).astype(matmul_dtype)

    bias2d = jnp.reshape(bias, (C_out, 1)).astype(f32)

    kernel = functools.partial(
        _simconv_kernel, K=K, C_in_pad=C_in_pad, batch_block=batch_block,
        matmul_dtype=matmul_dtype)

    # --- Explicit VMEM budget (per grid step) --------------------------------
    it_mm = jnp.dtype(matmul_dtype).itemsize
    it_out = jnp.dtype(x.dtype).itemsize
    vmem_needed = (
        M * M * it_mm                      # L^T (single-buffered)
        + 2 * bb * C_in_pad * M * 4        # x block (double-buffered)
        + C_out * K * C_in_pad * it_mm     # theta (single-buffered)
        + 2 * bb * C_out * M * it_out      # out block (double-buffered)
        + bb * K * C_in_pad * M * 4        # staging scratch
        + 4 * bb * C_in_pad * M * 4        # recurrence temporaries + MXU casts
    )
    # ~30% headroom; never below the 32 MiB default, never past 100 MiB.
    # NOTE: on v7x (64 MiB physical) whole-L-resident caps out around M~3k for
    # f32 L (~6k bf16); the next step for larger M is tiling the recurrence
    # over L column blocks with pltpu.emit_pipeline — not implemented here.
    vmem_limit = min(max(int(vmem_needed * 1.3), 32 * 1024 * 1024),
                     100 * 1024 * 1024)

    # Advisory cost hint (L counted ONCE — it is grid-invariant) so XLA
    # schedules the cheap wrapper reshapes/transpose around the kernel.
    flops = (2 * B * C_in_pad * M * M * max(K - 1, 0)
             + 2 * B * C_out * K * C_in_pad * M)
    bytes_accessed = (M * M * it_mm + B * C_in_pad * M * 4
                      + C_out * K * C_in_pad * it_mm + C_out * 4
                      + B * C_out * M * it_out)

    grid_invariant = dict(pipeline_mode=pl.Buffered(1))   # fetched once: 1 buffer

    return pl.pallas_call(
        kernel,
        out_shape=jax.ShapeDtypeStruct((B, C_out, M), x.dtype),
        grid_spec=pltpu.PrefetchScalarGridSpec(
            num_scalar_prefetch=0,
            grid=(num_groups,),
            in_specs=[
                pl.BlockSpec((M, M), lambda g: (0, 0), **grid_invariant),     # L^T
                pl.BlockSpec((bb * C_in_pad, M), lambda g: (g, 0)),           # x rows
                pl.BlockSpec((C_out, K * C_in_pad), lambda g: (0, 0),
                             **grid_invariant),                               # theta
                pl.BlockSpec((C_out, 1), lambda g: (0, 0), **grid_invariant), # bias
            ],
            out_specs=pl.BlockSpec((bb, C_out, M), lambda g: (g, 0, 0)),
            scratch_shapes=[
                pltpu.VMEM((bb * K * C_in_pad, M), jnp.float32),   # T_k staging
            ],
        ),
        compiler_params=pltpu.CompilerParams(
            dimension_semantics=("parallel",),
            vmem_limit_bytes=vmem_limit),
        cost_estimate=pl.CostEstimate(
            flops=flops, transcendentals=0, bytes_accessed=bytes_accessed),
    )(Lt, x_flat, theta_flat, bias2d)


def _reference(L, x, theta, bias, K):
    T = [x]
    if K > 1:
        T.append(jnp.einsum('mn,bcn->bcm', L, x))
    for _ in range(2, K):
        T.append(2.0 * jnp.einsum('mn,bcn->bcm', L, T[-1]) - T[-2])
    X = jnp.stack(T, axis=-1)                       # (B, C_in, M, K)
    return jnp.einsum('bimk,oik->bom', X, theta) + bias


if __name__ == "__main__":
    # Module hyperparameters
    K, C_in, C_out = 3, 4, 8
    variance = 1.0
    # Input sizes (M on lanes -> multiple of 128)
    B, M = 2, 128

    key = jax.random.PRNGKey(0)
    k_L, k_x, k_theta = jax.random.split(key, 3)

    # Symmetric "Laplacian"-like operator on M simplices.
    A = jax.random.normal(k_L, (M, M), dtype=jnp.float32) * 0.1
    L = (A + A.T) * 0.5

    x = jax.random.normal(k_x, (B, C_in, M), dtype=jnp.float32)

    # Deterministic parameter init (matches shapes in __init__).
    theta = variance * jax.random.normal(k_theta, (C_out, C_in, K),
                                         dtype=jnp.float32)
    bias = jnp.zeros((1, C_out, 1), dtype=jnp.float32)

    y_ref = _reference(L, x, theta, bias, K)

    # f32 MXU path: tight check against the f32 reference.
    y32 = simplicial_convolution(L, x, theta, bias, K=K,
                                 matmul_dtype=jnp.float32)
    y32 = jax.block_until_ready(y32)
    assert y32.shape == (B, C_out, M)
    assert jnp.allclose(y32, y_ref, atol=1e-4, rtol=1e-4), "f32 mismatch vs ref"

    # Default bf16-MXU path (f32 state/accumulation): looser sanity check.
    ybf = simplicial_convolution(L, x, theta, bias, K=K)
    ybf = jax.block_until_ready(ybf)
    rel = jnp.linalg.norm(ybf - y_ref) / jnp.linalg.norm(y_ref)
    assert rel < 5e-2, f"bf16 path too far from reference: rel={rel}"

    print("KERNEL_OK")
</pallas_src>

<mosaic_0001>
module attributes {stable_mosaic.version = 11 : i64} {
  func.func @_simconv_kernel(%arg0: i32, %arg1: memref<128x128xf32, #tpu.memory_space<vmem>>, %arg2: memref<16x128xf32, #tpu.memory_space<vmem>>, %arg3: memref<8x24xf32, #tpu.memory_space<vmem>>, %arg4: memref<8x1xf32, #tpu.memory_space<vmem>>, %arg5: memref<2x8x128xf32, #tpu.memory_space<vmem>>, %arg6: memref<48x128xf32, #tpu.memory_space<vmem>>) attributes {dimension_semantics = [#tpu.dimension_semantics<parallel>], iteration_bounds = array<i64: 1>, scalar_prefetch = 0 : i64, scratch_operands = 1 : i64, tpu.core_type = #tpu.core_type<tc>, window_params = [{pipeline_mode = #tpu.pipeline_mode<synchronous>, transform_indices = @transform_0, window_bounds = array<i64: 128, 128>}, {transform_indices = @transform_1, window_bounds = array<i64: 16, 128>}, {pipeline_mode = #tpu.pipeline_mode<synchronous>, transform_indices = @transform_2, window_bounds = array<i64: 8, 24>}, {pipeline_mode = #tpu.pipeline_mode<synchronous>, transform_indices = @transform_3, window_bounds = array<i64: 8, 1>}, {transform_indices = @transform_4, window_bounds = array<i64: 2, 8, 128>}]} {
    %c0 = arith.constant 0 : index
    %c0_0 = arith.constant 0 : index
    %0 = vector.load %arg1[%c0, %c0_0] : memref<128x128xf32, #tpu.memory_space<vmem>>, vector<128x128xf32>
    %c0_1 = arith.constant 0 : index
    %c0_2 = arith.constant 0 : index
    %1 = vector.load %arg2[%c0_1, %c0_2] : memref<16x128xf32, #tpu.memory_space<vmem>>, vector<16x128xf32>
    %2 = vector.extract_strided_slice %1 {offsets = [0, 0], sizes = [8, 128], strides = [1, 1]} : vector<16x128xf32> to vector<8x128xf32>
    %c0_3 = arith.constant 0 : index
    %c0_4 = arith.constant 0 : index
    %3 = vector.load %arg6[%c0_3, %c0_4] : memref<48x128xf32, #tpu.memory_space<vmem>>, vector<8x128xf32>
    tpu.vector_store %arg6[%c0_3, %c0_4], %2 {strides = array<i32>} : memref<48x128xf32, #tpu.memory_space<vmem>>, vector<8x128xf32>,
    %4 = vector.extract_strided_slice %1 {offsets = [8, 0], sizes = [8, 128], strides = [1, 1]} : vector<16x128xf32> to vector<8x128xf32>
    %c24 = arith.constant 24 : index
    %c0_5 = arith.constant 0 : index
    %5 = vector.load %arg6[%c24, %c0_5] : memref<48x128xf32, #tpu.memory_space<vmem>>, vector<8x128xf32>
    tpu.vector_store %arg6[%c24, %c0_5], %4 {strides = array<i32>} : memref<48x128xf32, #tpu.memory_space<vmem>>, vector<8x128xf32>,
    %cst = arith.constant dense<0.000000e+00> : vector<16x128xf32>
    %6 = tpu.matmul %1, %0, %cst {dimension_numbers = #tpu.dot_dimension_numbers<[1], [0], [0], [1], [0, 0, 1, 1], [], []>} : vector<16x128xf32>, vector<128x128xf32>, vector<16x128xf32> -> vector<16x128xf32>
    %7 = vector.extract_strided_slice %6 {offsets = [0, 0], sizes = [8, 128], strides = [1, 1]} : vector<16x128xf32> to vector<8x128xf32>
    %c8 = arith.constant 8 : index
    %c0_6 = arith.constant 0 : index
    %8 = vector.load %arg6[%c8, %c0_6] : memref<48x128xf32, #tpu.memory_space<vmem>>, vector<8x128xf32>
    tpu.vector_store %arg6[%c8, %c0_6], %7 {strides = array<i32>} : memref<48x128xf32, #tpu.memory_space<vmem>>, vector<8x128xf32>,
    %9 = vector.extract_strided_slice %6 {offsets = [8, 0], sizes = [8, 128], strides = [1, 1]} : vector<16x128xf32> to vector<8x128xf32>
    %c32 = arith.constant 32 : index
    %c0_7 = arith.constant 0 : index
    %10 = vector.load %arg6[%c32, %c0_7] : memref<48x128xf32, #tpu.memory_space<vmem>>, vector<8x128xf32>
    tpu.vector_store %arg6[%c32, %c0_7], %9 {strides = array<i32>} : memref<48x128xf32, #tpu.memory_space<vmem>>, vector<8x128xf32>,
    %cst_8 = arith.constant dense<0.000000e+00> : vector<16x128xf32>
    %11 = tpu.matmul %6, %0, %cst_8 {dimension_numbers = #tpu.dot_dimension_numbers<[1], [0], [0], [1], [0, 0, 1, 1], [], []>} : vector<16x128xf32>, vector<128x128xf32>, vector<16x128xf32> -> vector<16x128xf32>
    %cst_9 = arith.constant 2.000000e+00 : f32
    %12 = vector.broadcast %cst_9 : f32 to vector<16x128xf32>
    %13 = arith.mulf %12, %11 : vector<16x128xf32>
    %14 = arith.subf %13, %1 : vector<16x128xf32>
    %15 = vector.extract_strided_slice %14 {offsets = [0, 0], sizes = [8, 128], strides = [1, 1]} : vector<16x128xf32> to vector<8x128xf32>
    %c16 = arith.constant 16 : index
    %c0_10 = arith.constant 0 : index
    %16 = vector.load %arg6[%c16, %c0_10] : memref<48x128xf32, #tpu.memory_space<vmem>>, vector<8x128xf32>
    tpu.vector_store %arg6[%c16, %c0_10], %15 {strides = array<i32>} : memref<48x128xf32, #tpu.memory_space<vmem>>, vector<8x128xf32>,
    %17 = vector.extract_strided_slice %14 {offsets = [8, 0], sizes = [8, 128], strides = [1, 1]} : vector<16x128xf32> to vector<8x128xf32>
    %c40 = arith.constant 40 : index
    %c0_11 = arith.constant 0 : index
    %18 = vector.load %arg6[%c40, %c0_11] : memref<48x128xf32, #tpu.memory_space<vmem>>, vector<8x128xf32>
    tpu.vector_store %arg6[%c40, %c0_11], %17 {strides = array<i32>} : memref<48x128xf32, #tpu.memory_space<vmem>>, vector<8x128xf32>,
    %c0_12 = arith.constant 0 : index
    %c0_13 = arith.constant 0 : index
    %19 = vector.load %arg3[%c0_12, %c0_13] : memref<8x24xf32, #tpu.memory_space<vmem>>, vector<8x24xf32>
    %c0_14 = arith.constant 0 : index
    %c0_15 = arith.constant 0 : index
    %20 = vector.load %arg4[%c0_14, %c0_15] : memref<8x1xf32, #tpu.memory_space<vmem>>, vector<8x1xf32>
    %21 = vector.shape_cast %20 : vector<8x1xf32> to vector<8x1xf32>
    %22 = vector.broadcast %21 : vector<8x1xf32> to vector<8x128xf32>
    %c0_16 = arith.constant 0 : index
    %c0_17 = arith.constant 0 : index
    %23 = vector.load %arg6[%c0_16, %c0_17] : memref<48x128xf32, #tpu.memory_space<vmem>>, vector<24x128xf32>
    %cst_18 = arith.constant dense<0.000000e+00> : vector<8x128xf32>
    %24 = tpu.matmul %19, %23, %cst_18 {dimension_numbers = #tpu.dot_dimension_numbers<[1], [0], [0], [1], [0, 0, 1, 1], [], []>} : vector<8x24xf32>, vector<24x128xf32>, vector<8x128xf32> -> vector<8x128xf32>
    %25 = arith.addf %24, %22 : vector<8x128xf32>
    %c0_19 = arith.constant 0 : index
    %c0_20 = arith.constant 0 : index
    %c0_21 = arith.constant 0 : index
    %26 = vector.load %arg5[%c0_19, %c0_20, %c0_21] : memref<2x8x128xf32, #tpu.memory_space<vmem>>, vector<1x8x128xf32>
    %27 = vector.shape_cast %26 : vector<1x8x128xf32> to vector<8x128xf32>
    %28 = vector.shape_cast %25 : vector<8x128xf32> to vector<1x8x128xf32>
    tpu.vector_store %arg5[%c0_19, %c0_20, %c0_21], %28 {strides = array<i32>} : memref<2x8x128xf32, #tpu.memory_space<vmem>>, vector<1x8x128xf32>,
    %c24_22 = arith.constant 24 : index
    %c0_23 = arith.constant 0 : index
    %29 = vector.load %arg6[%c24_22, %c0_23] : memref<48x128xf32, #tpu.memory_space<vmem>>, vector<24x128xf32>
    %cst_24 = arith.constant dense<0.000000e+00> : vector<8x128xf32>
    %30 = tpu.matmul %19, %29, %cst_24 {dimension_numbers = #tpu.dot_dimension_numbers<[1], [0], [0], [1], [0, 0, 1, 1], [], []>} : vector<8x24xf32>, vector<24x128xf32>, vector<8x128xf32> -> vector<8x128xf32>
    %31 = arith.addf %30, %22 : vector<8x128xf32>
    %c1 = arith.constant 1 : index
    %c0_25 = arith.constant 0 : index
    %c0_26 = arith.constant 0 : index
    %32 = vector.load %arg5[%c1, %c0_25, %c0_26] : memref<2x8x128xf32, #tpu.memory_space<vmem>>, vector<1x8x128xf32>
    %33 = vector.shape_cast %32 : vector<1x8x128xf32> to vector<8x128xf32>
    %34 = vector.shape_cast %31 : vector<8x128xf32> to vector<1x8x128xf32>
    tpu.vector_store %arg5[%c1, %c0_25, %c0_26], %34 {strides = array<i32>} : memref<2x8x128xf32, #tpu.memory_space<vmem>>, vector<1x8x128xf32>,
    return
  }
  func.func @transform_0(%arg0: i32) -> (i32, i32) {
    %c0_i32 = arith.constant 0 : i32
    %c0_i32_0 = arith.constant 0 : i32
    %c0_i32_1 = arith.constant 0 : i32
    return %c0_i32, %c0_i32_0 : i32, i32
  }
  func.func @transform_1(%arg0: i32) -> (i32, i32) {
    %c0_i32 = arith.constant 0 : i32
    %c0_i32_0 = arith.constant 0 : i32
    return %arg0, %c0_i32 : i32, i32
  }
  func.func @transform_2(%arg0: i32) -> (i32, i32) {
    %c0_i32 = arith.constant 0 : i32
    %c0_i32_0 = arith.constant 0 : i32
    %c0_i32_1 = arith.constant 0 : i32
    return %c0_i32, %c0_i32_0 : i32, i32
  }
  func.func @transform_3(%arg0: i32) -> (i32, i32) {
    %c0_i32 = arith.constant 0 : i32
    %c0_i32_0 = arith.constant 0 : i32
    %c0_i32_1 = arith.constant 0 : i32
    return %c0_i32, %c0_i32_0 : i32, i32
  }
  func.func @transform_4(%arg0: i32) -> (i32, i32, i32) {
    %c0_i32 = arith.constant 0 : i32
    %c0_i32_0 = arith.constant 0 : i32
    %c0_i32_1 = arith.constant 0 : i32
    return %arg0, %c0_i32, %c0_i32_0 : i32, i32, i32
  }
}

</mosaic_0001>

<bundles_post_ra>
// kernel: tpu_custom_call.1
= control target key start
LH: loop header
LB: loop body
LE: loop exit
PB: predicated region body
PF: predicated region fallthrough
CT: control target
= control target key end

     0   :  { %9 = vsyncpa [#allocation4], 0  ;;  %s778_s0 = inlined_call_operand.hbm [shape: f32[128,128], index: 0, kind: input, shape index: {}]   ;;  %s779_s1 = inlined_call_operand.hbm [shape: f32[16,128], index: 1, kind: input, shape index: {}]   ;;  %s780_s2 = inlined_call_operand.vmem [shape: f32[8,24], index: 2, kind: input, shape index: {}]   ;;  %s781_s3 = inlined_call_operand.vmem [shape: f32[8,1], index: 3, kind: input, shape index: {}]   ;;  %s782_s4 = inlined_call_operand.hbm [shape: f32[2,8,128], index: 4, kind: output, shape index: {}]  }
   0x1   :  { %10 = vsyncpa [#allocation7], 0 }
   0x2   :  { %11 = vsyncpa [#allocation5], 0  ;;  %s688_s15 = smov [#allocation3]   ;;  %s616_s19 = scalar_lea.hbm %s778_s0, 2048 }
   0x3   :  { %s17_s16 = sshll.u32 %s688_s15, 4  ;;  %p617_p0 = scmp.ne.s32.totalorder %s778_s0, %s616_s19  ;;  %s18_s16 = int_to_ptr.vmem [resolvable:$true] %s17_s16 }
   0x4   :  { %p620_p1 = scmp.lt.u32.totalorder %s616_s19, %s778_s0 }
   0x6   :  { %p622_p2 = pnand %p620_p1, %p617_p0 }
   0x8   :  { %625 = shalt.err (!%p622_p2)
}
   0x9   :  { %s626_s24 = scalar_lea.vmem %s18_s16, 2048  ;;  %p631_p4 = scmp.lt.s32.totalorder %s18_s16, %s18_s16 }
   0xa   :  { %p627_p3 = scmp.ne.s32.totalorder %s18_s16, %s626_s24  ;;  %p632_p5 = scmp.lt.s32.totalorder %s626_s24, %s626_s24 }
   0xc   :  { %p633_p6 = por %p632_p5, %p631_p4 }
   0xe   :  { %p634_p7 = pnand %p633_p6, %p627_p3 }
  0x10   :  { %637 = shalt.err (!%p634_p7)
}
  0x11   :  { %s689_s25 = smov 128   ;;  %s690_s26 = smov 8  }
  0x12   :  { %23 = dma.hbm_to_vmem [thread:$0]  %s778_s0, 2048, %s18_s16, [#allocation4], %s689_s25, %s689_s25, %s690_s26  }
  0x13   :  { %s691_s29 = smov [#allocation6]   ;;  %s638_s7 = scalar_lea.hbm %s779_s1, 256 }
  0x14   :  { %s29_s30 = sshll.u32 %s691_s29, 4  ;;  %p639_p8 = scmp.ne.s32.totalorder %s779_s1, %s638_s7  ;;  %s30_s30 = int_to_ptr.vmem [resolvable:$true] %s29_s30 }
  0x15   :  { %p642_p9 = scmp.lt.u32.totalorder %s638_s7, %s779_s1 }
  0x17   :  { %p644_p10 = pnand %p642_p9, %p639_p8 }
  0x19   :  { %647 = shalt.err (!%p644_p10)
}
  0x1a   :  { %s648_s12 = scalar_lea.vmem %s30_s30, 256  ;;  %p653_p12 = scmp.lt.s32.totalorder %s30_s30, %s30_s30 }
  0x1b   :  { %p649_p11 = scmp.ne.s32.totalorder %s30_s30, %s648_s12  ;;  %p654_p13 = scmp.lt.s32.totalorder %s648_s12, %s648_s12 }
  0x1d   :  { %p655_p0 = por %p654_p13, %p653_p12 }
  0x1f   :  { %p656_p1 = pnand %p655_p0, %p649_p11 }
  0x21   :  { %659 = shalt.err (!%p656_p1)
}
  0x22   :  { %35 = dma.hbm_to_vmem [thread:$0]  %s779_s1, 256, %s30_s30, [#allocation7], %s689_s25, %s689_s25, %s690_s26  }
  0x23   :  { %682 = dma.done.wait [#allocation4], 2048  }
  0x24   :  { %683 = vsyncadd [#allocation4], 4294965248 }
  0x25   :  { %684 = dma.done.wait [#allocation7], 256  }
  0x26   :  { %685 = vsyncadd [#allocation7], 4294967040  ;;  %v46_v0 = vld [vmem:[#allocation3] sm:$0xff]  ;;  %v47_v1 = vld [vmem:[#allocation3 + $0x8] sm:$0xff]  ;;  %v692_v26 = vmov 0.0|0.0   ;;  %v693_v31 = vmov 0.0  }
  0x27   :  { %v48_v2 = vld [vmem:[#allocation3 + $0x10] sm:$0xff]  ;;  %v536_v3 = vpack.c.bf16 %v47_v1, %v46_v0  ;;  %v49_v4 = vld [vmem:[#allocation3 + $0x18] sm:$0xff]  ;;  %v50_v6 = vld [vmem:[#allocation3 + $0x20] sm:$0xff]  ;;  %vm694_vm0 = vmmov 0   ;;  %v695_v33 = vmov 0   ;;  %vm234_vm1 = vcmask 195584  }
  0x28   :  { %v540_v5 = vpack.c.bf16 %v49_v4, %v48_v2  ;;  %v51_v7 = vld [vmem:[#allocation3 + $0x28] sm:$0xff]  ;;  %v752_v9 = vld [vmem:[#allocation6] sm:$0xff]  ;;  %v52_v10 = vld [vmem:[#allocation3 + $0x30] sm:$0xff]  ;;  %615 = vset.pattern.permute.xlu0 %v695_v33 }
  0x29   :  { %537 = vmatprep.subr.bf16.mxu0 %v536_v3  ;;  %569 = vmatprep.subr.bf16.mxu1 %v536_v3  ;;  %v544_v8 = vpack.c.bf16 %v51_v7, %v50_v6  ;;  %v53_v11 = vld [vmem:[#allocation3 + $0x38] sm:$0xff]  ;;  %v54_v13 = vld [vmem:[#allocation3 + $0x40] sm:$0xff]  ;;  %v55_v14 = vld [vmem:[#allocation3 + $0x48] sm:$0xff] }
  0x2a   :  { %539 = vmatpush3.bf16.msra.mxu0 %v536_v3  ;;  %571 = vmatpush3.bf16.msra.mxu1 %v536_v3  ;;  %v548_v12 = vpack.c.bf16 %v53_v11, %v52_v10  ;;  %v552_v15 = vpack.c.bf16 %v55_v14, %v54_v13  ;;  %v56_v16 = vld [vmem:[#allocation3 + $0x50] sm:$0xff]  ;;  %v57_v17 = vld [vmem:[#allocation3 + $0x58] sm:$0xff]  ;;  %v58_v19 = vld [vmem:[#allocation3 + $0x60] sm:$0xff] }
  0x2b   :  { %541 = vmatprep.subr.bf16.mxu0 %v540_v5  ;;  %573 = vmatprep.subr.bf16.mxu1 %v540_v5  ;;  %v556_v18 = vpack.c.bf16 %v57_v17, %v56_v16  ;;  %v59_v20 = vld [vmem:[#allocation3 + $0x68] sm:$0xff]  ;;  %v60_v22 = vld [vmem:[#allocation3 + $0x70] sm:$0xff]  ;;  %v61_v23 = vld [vmem:[#allocation3 + $0x78] sm:$0xff] }
  0x2c   :  { %480 = vmatprep.mubr.f32.mxu0 %v752_v9  ;;  %v560_v21 = vpack.c.bf16 %v59_v20, %v58_v19  ;;  %v564_v24 = vpack.c.bf16 %v61_v23, %v60_v22  ;;  %v63_v25 = vld [vmem:[#allocation6 + $0x8] sm:$0xff]  ;;  %v225_v32 = vld [vmem:[%s781_s3] sm:$0xff]  ;;  %s696_s3 = smov [#allocation8]  }
  0x2d   :  { %228 = vperm.xlu0 %615, %v225_v32   ;;  %v224_v39 = vld [vmem:[%s780_s2] sm:$0xff]  ;;  %s389_s17 = sshll.u32 %s696_s3, 4  ;;  %s390_s17 = int_to_ptr.vmem [resolvable:$true] %s389_s17 }
  0x2e   :  { %543 = vmatpush3.bf16.msra.mxu0 %v540_v5  ;;  %575 = vmatpush3.bf16.msra.mxu1 %v540_v5  ;;  %s660_s2 = scalar_lea.vmem %s390_s17, 256  ;;  %p665_p3 = scmp.lt.s32.totalorder %s390_s17, %s390_s17 }
  0x2f   :  { %545 = vmatprep.subr.bf16.mxu0 %v544_v8  ;;  %577 = vmatprep.subr.bf16.mxu1 %v544_v8  ;;  %p661_p2 = scmp.ne.s32.totalorder %s390_s17, %s660_s2  ;;  %p666_p4 = scmp.lt.s32.totalorder %s660_s2, %s660_s2 }
  0x31   :  { %p667_p5 = por %p666_p4, %p665_p3 }
  0x32   :  { %547 = vmatpush3.bf16.msra.mxu0 %v544_v8  ;;  %579 = vmatpush3.bf16.msra.mxu1 %v544_v8 }
  0x33   :  { %549 = vmatprep.subr.bf16.mxu0 %v548_v12  ;;  %581 = vmatprep.subr.bf16.mxu1 %v548_v12  ;;  %p668_p6 = pnand %p667_p5, %p661_p2 }
  0x36   :  { %551 = vmatpush3.bf16.msra.mxu0 %v548_v12  ;;  %583 = vmatpush3.bf16.msra.mxu1 %v548_v12 }
  0x37   :  { %553 = vmatprep.subr.bf16.mxu0 %v552_v15  ;;  %585 = vmatprep.subr.bf16.mxu1 %v552_v15 }
  0x3a   :  { %555 = vmatpush3.bf16.msra.mxu0 %v552_v15  ;;  %587 = vmatpush3.bf16.msra.mxu1 %v552_v15 }
  0x3b   :  { %557 = vmatprep.subr.bf16.mxu0 %v556_v18  ;;  %589 = vmatprep.subr.bf16.mxu1 %v556_v18 }
  0x3e   :  { %559 = vmatpush3.bf16.msra.mxu0 %v556_v18  ;;  %591 = vmatpush3.bf16.msra.mxu1 %v556_v18 }
  0x3f   :  { %561 = vmatprep.subr.bf16.mxu0 %v560_v21  ;;  %593 = vmatprep.subr.bf16.mxu1 %v560_v21 }
  0x42   :  { %563 = vmatpush3.bf16.msra.mxu0 %v560_v21  ;;  %595 = vmatpush3.bf16.msra.mxu1 %v560_v21 }
  0x43   :  { %565 = vmatprep.subr.bf16.mxu0 %v564_v24  ;;  %597 = vmatprep.subr.bf16.mxu1 %v564_v24 }
  0x46   :  { %567 = vmatpush3.bf16.msra.mxu0 %v564_v24  ;;  %599 = vmatpush3.bf16.msra.mxu1 %v564_v24 }
  0x47   :  { %603 = vmatprep.subr.bf16.mxu1 %v692_v26  ;;  %600 = vmatprep.subr.bf16.mxu0 %v692_v26 }
  0x49   :  { %481 = vmatmul.mubr.f32.vlgmr.msra.gmra.mrb[0].mxu0 %v63_v25 }
  0x4a   :  { %524 = vmatprep.mubr.msk.f32.mxu0 %vm694_vm0, %v693_v31 }
  0xac   :  { %v229_v41 = vpop.permute.xlu0 %228 }
 0x11c   :  { %v482_v27 = vpop.f32.mrb[0].mxu0 }
 0x11d   :  { %v604_v28 = vpack.c.bf16 %v482_v27, %v63_v25  ;;  %v132_v29 = vpop.f32.mrb[1].mxu0 }
 0x11e   :  { %v601_v30 = vpack.c.bf16 %v132_v29, %v752_v9  ;;  %515 = vmatprep.mubr.f32.mxu1 %v132_v29 }
 0x11f   :  { %516 = vmatmul.mubr.f32.vlgmr.msra.gmra.mrb[0].mxu1 %v482_v27 }
 0x120   :  { %605 = vmatpush3.bf16.msra.mxu1 %v604_v28  ;;  %602 = vmatpush3.bf16.msra.mxu0 %v601_v30 }
 0x121   :  { %531 = vmatprep.subr.mxu1 %v693_v31  ;;  %522 = vmatprep.subr.mxu0 %v693_v31 }
 0x122   :  { %533 = vmatprep.mubr.msk.f32.mxu1 %vm694_vm0, %v693_v31 }
 0x1f2   :  { %v517_v34 = vpop.f32.mrb[0].mxu1 }
 0x1f3   :  { %v219_v35 = vmul.f32 2.0, %v517_v34  ;;  %v209_v36 = vpop.f32.mrb[1].mxu1 }
 0x1f4   :  { %v218_v37 = vmul.f32 2.0, %v209_v36 }
 0x1f5   :  { %v221_v38 = vsub.f32 %v219_v35, %v63_v25 }
 0x1f6   :  { %v220_v40 = vsub.f32 %v218_v37, %v752_v9 }
 0x1f7   :  { %532 = vmatpush3.msra.mxu1 %v221_v38 }
 0x1f8   :  { %523 = vmatpush3.msra.mxu0 %v220_v40  ;;  %534 = vmatmul.mubr.msk.f32.vlgmr.msra.gmra.mrb[2].mxu1 %vm234_vm1, %v224_v39 }
 0x1f9   :  { %525 = vmatmul.mubr.msk.f32.vlgmr.msra.gmra.mrb[2].mxu0 %vm234_vm1, %v224_v39 }
 0x2cb   :  { %v378_v42 = vpop.f32.mrb[2].mxu1 }
 0x2cc   :  { %v304_v43 = vpop.f32.mrb[2].mxu0  ;;  %v379_v44 = vadd.f32 %v378_v42, %v229_v41  ;;  %v535_v45 = vpop.f32.mrb[3].mxu1 }
 0x2cd   :  { %v305_v46 = vadd.f32 %v304_v43, %v229_v41  ;;  %v526_v47 = vpop.f32.mrb[3].mxu0 }
 0x2ce   :  { %383 = vst [vmem:[#allocation8 + $0x8] sm:$0xff] %v379_v44 }
 0x2cf   :  { %308 = vst [vmem:[#allocation8] sm:$0xff] %v305_v46 }
 0x2d0   :  { %671 = shalt.err (!%p668_p6)
}
 0x2d1   :  { %s672_s20 = scalar_lea.hbm %s782_s4, 256 }
 0x2d2   :  { %p673_p7 = scmp.ne.s32.totalorder %s782_s4, %s672_s20  ;;  %p676_p8 = scmp.lt.u32.totalorder %s672_s20, %s782_s4 }
 0x2d4   :  { %p678_p9 = pnand %p676_p8, %p673_p7 }
 0x2d6   :  { %681 = shalt.err (!%p678_p9)
}
 0x2d7   :  { %395 = dma.vmem_to_hbm [thread:$0]  %s390_s17, 256, %s782_s4, [#allocation5], %s689_s25, %s689_s25, %s690_s26  }
 0x2d8   :  { %686 = dma.done.wait [#allocation5], 256  }
 0x2d9   :  { %687 = vsyncadd [#allocation5], 4294967040 }
 0x2da   :  { %399 = vsyncpa [#allocation4], 1 }
 0x2db   :  { %400 = vsyncpa [#allocation7], 1 }
 0x2dc   :  { %401 = vsyncpa [#allocation5], 1 }

</bundles_post_ra>
